<compile_context>
chip_gen: v6e
topology: v6e:2x2x1
jax: 0.10.0
libtpu: 0.0.40
codegen_flags: <defaults>
</compile_context>

<pallas_src>
import functools

import jax
import jax.numpy as jnp
from jax.experimental import pallas as pl
from jax.experimental.pallas import tpu as pltpu

_LANE = 128  # lane width: partial last-dim blocks must be a multiple of this


def _pwc_kernel(w_ref, x_ref, o_ref, *, precision):
    # w_ref: (C_out, C_in)   resident weight (constant index_map).
    # x_ref: (C_in, TILE_HW) pixel tile (channels on sublanes, pixels on lanes).
    # o_ref: (C_out, TILE_HW)
    o_ref[...] = jnp.dot(
        w_ref[...],
        x_ref[...],
        preferred_element_type=jnp.float32,
        precision=precision,
    ).astype(o_ref.dtype)


def _vmem_capacity_bytes() -> int:
    """Physical VMEM of the current chip (conservative fallback if unknown)."""
    try:
        return int(pltpu.get_tpu_info().vmem_capacity_bytes)
    except Exception:
        return 64 * 1024 * 1024  # v7x-sized fallback: safe on every generation


def _round_up(x: int, m: int) -> int:
    return -(-x // m) * m


def _pick_tile_hw(hw: int, n: int, c_in: int, c_out: int, dtype_bytes: int,
                  vmem_cap: int) -> int:
    """Largest useful pixel tile whose double-buffered footprint fits VMEM."""
    # Use ~75% of physical VMEM for our buffers; the remainder is headroom for
    # the compiler's internal scratch.  vmem_limit_bytes is raised to match
    # (the old cap//2 limit left half of a 128 MiB part unused).
    budget = (vmem_cap * 3) // 4
    # Resident weight: constant index_map, but Pallas still double-buffers it.
    fixed = 2 * c_out * c_in * dtype_bytes
    # Double-buffered x tile + double-buffered out tile, per pixel.
    per_pixel = 2 * (c_in + c_out) * dtype_bytes
    # Cap the combined x/out tile footprint: once per-step DMAs are several
    # MiB the ~0.35us step overhead is already <5%, and keeping more grid
    # steps helps megacore load balance.
    avail = min(budget - fixed, 48 * 1024 * 1024)
    cap_px = max(_LANE, avail // per_pixel)

    if hw <= cap_px:
        # Whole image fits in one tile.  If that would produce a 1-step grid
        # (N == 1), split the pixels in two so a 2-TensorCore chip (v7x) can
        # shard the work across cores via the "parallel" grid axes.
        if n == 1 and hw >= 2 * _LANE:
            return _round_up(-(-hw // 2), _LANE)
        return hw  # full last dim == always a legal block shape

    # Partial tile: must be a multiple of the lane width.
    tile = max(_LANE, (cap_px // _LANE) * _LANE)
    # Prefer a lane-multiple tile that divides hw: every store stays an
    # unmasked lane-dense vst and there is no nearly-empty ragged tail step.
    # Don't sacrifice more than 2x tile size for divisibility.
    t = tile
    while t >= max(_LANE, tile // 2):
        if hw % t == 0:
            return t
        t -= _LANE
    return tile


def conv_compactor_2d_forward(x_nchw: jax.Array, weight: jax.Array, *,
                              precision=None) -> jax.Array:
    """1x1 conv (no bias) matching ConvCompactor2d.forward.

    Args:
      x_nchw: (N, C_in, H, W) input.
      weight: (C_out, C_in, 1, 1) conv weight (C_out == C_in for the compactor).
      precision: optional jax.lax.Precision override for the channel matmul.
    Returns:
      (N, C_out, H, W) output.
    """
    n, c_in, h, w = x_nchw.shape
    c_out = weight.shape[0]
    hw = h * w

    # Pure reshapes of trailing dims only: no extra HBM traffic.
    x3d = x_nchw.reshape(n, c_in, hw)
    # Cast once (not per tile).  For bf16 activations the weight is applied in
    # bf16 with f32 accumulation (not bit-parity with an f32 torch conv).
    w2d = weight.reshape(c_out, c_in).astype(x_nchw.dtype)

    dtype_bytes = jnp.dtype(x_nchw.dtype).itemsize
    vmem_cap = _vmem_capacity_bytes()
    tile_hw = _pick_tile_hw(hw, n, c_in, c_out, dtype_bytes, vmem_cap)

    # Explicit footprint check: if even the minimum tile does not fit physical
    # VMEM (only for extreme channel counts, roughly C >= ~2800 in f32 on a
    # 64 MiB v7x part), fail loudly instead of silently OOM-ing at compile.
    footprint = (2 * c_out * c_in
                 + 2 * (c_in + c_out) * min(tile_hw, hw)) * dtype_bytes
    if footprint > vmem_cap:
        # TODO(synk): for such extreme channel counts, tile C_out over an extra
        # grid axis (or single-buffer the weight via pipeline_mode=pl.Buffered(1)).
        raise ValueError(
            f"ConvCompactor2d kernel needs {footprint} bytes of VMEM but the "
            f"chip only has {vmem_cap}; channel count too large for a fully "
            f"resident (C_out, C_in) weight.")

    vmem_limit = min(vmem_cap, footprint + 16 * 1024 * 1024)

    if precision is None:
        # HIGHEST (multi-pass f32 on the MXU) is free while the op is
        # HBM-bound, which holds for C_in <= ~128 on every TPU generation.
        # For larger contractions fall back to DEFAULT so the extra MXU passes
        # do not become the critical path on v5e/v7x.
        if x_nchw.dtype == jnp.float32 and c_in <= 128:
            precision = jax.lax.Precision.HIGHEST
        else:
            precision = jax.lax.Precision.DEFAULT

    grid = (n, pl.cdiv(hw, tile_hw))  # both axes independent -> fully parallel

    cost = pl.CostEstimate(
        flops=2 * n * hw * c_in * c_out,
        transcendentals=0,
        bytes_accessed=(n * hw * (c_in + c_out) + c_in * c_out) * dtype_bytes,
    )

    kernel = functools.partial(_pwc_kernel, precision=precision)

    out3d = pl.pallas_call(
        kernel,
        out_shape=jax.ShapeDtypeStruct((n, c_out, hw), x_nchw.dtype),
        grid_spec=pltpu.PrefetchScalarGridSpec(
            num_scalar_prefetch=0,
            grid=grid,
            in_specs=[
                # Weight: constant index_map -> DMA'd once, stays resident.
                pl.BlockSpec((c_out, c_in), lambda b, j: (0, 0)),
                # x tile: batch squeezed, full channel dim, lane-dense pixels.
                pl.BlockSpec((None, c_in, tile_hw), lambda b, j: (b, 0, j)),
            ],
            out_specs=pl.BlockSpec((None, c_out, tile_hw),
                                   lambda b, j: (b, 0, j)),
        ),
        compiler_params=pltpu.CompilerParams(
            dimension_semantics=("parallel", "parallel"),
            vmem_limit_bytes=int(vmem_limit),
        ),
        cost_estimate=cost,
    )(w2d, x3d)

    return out3d.reshape(n, c_out, h, w)


def make_conv_compactor_weight(num_features: int) -> jax.Array:
    """Deterministic init matching the PyTorch module: identity 1x1 conv."""
    return jnp.eye(num_features, dtype=jnp.float32).reshape(
        num_features, num_features, 1, 1)


# TODO(synk): set_mask / get_num_mask_ones / add_penalty_gradients /
# get_metric_vector are training-time bookkeeping outside the forward pass;
# not implemented as kernels.


if __name__ == "__main__":
    key = jax.random.PRNGKey(0)
    k_x, k_w, k_x1 = jax.random.split(key, 3)
    N, C, H, W = 2, 4, 16, 16
    HIGH = jax.lax.Precision.HIGHEST

    x = jax.random.normal(k_x, (N, C, H, W), dtype=jnp.float32)

    # 1) Identity weight (the module's deterministic init): y == x.
    weight = make_conv_compactor_weight(C)  # (C, C, 1, 1)
    y = jax.block_until_ready(conv_compactor_2d_forward(x, weight))
    ref = jnp.einsum("oc,nchw->nohw", weight.reshape(C, C), x, precision=HIGH)
    assert y.shape == (N, C, H, W)
    assert jnp.allclose(y, x, atol=1e-5, rtol=1e-5)
    assert jnp.allclose(y, ref, atol=1e-5, rtol=1e-5)

    # 2) Random weight (genuine channel-mixing check).
    w_rand = jax.random.normal(k_w, (C, C, 1, 1), dtype=jnp.float32)
    y2 = jax.block_until_ready(conv_compactor_2d_forward(x, w_rand))
    ref2 = jnp.einsum("oc,nchw->nohw", w_rand.reshape(C, C), x, precision=HIGH)
    assert jnp.allclose(y2, ref2, atol=1e-4, rtol=1e-4)

    # 3) N == 1 with a non-128-multiple spatial size: exercises the >=2-step
    #    grid split (for v7x's 2 TensorCores) and the ragged last pixel block.
    x1 = jax.random.normal(k_x1, (1, C, 20, 20), dtype=jnp.float32)
    y3 = jax.block_until_ready(conv_compactor_2d_forward(x1, w_rand))
    ref3 = jnp.einsum("oc,nchw->nohw", w_rand.reshape(C, C), x1, precision=HIGH)
    assert y3.shape == (1, C, 20, 20)
    assert jnp.allclose(y3, ref3, atol=1e-4, rtol=1e-4)

    print("KERNEL_OK")
</pallas_src>

<mosaic_0001>
module attributes {stable_mosaic.version = 11 : i64} {
  func.func @_pwc_kernel(%arg0: i32, %arg1: i32, %arg2: memref<4x4xf32, #tpu.memory_space<vmem>>, %arg3: memref<1x4x256xf32, #tpu.memory_space<vmem>>, %arg4: memref<1x4x256xf32, #tpu.memory_space<vmem>>) attributes {dimension_semantics = [#tpu.dimension_semantics<parallel>, #tpu.dimension_semantics<parallel>], iteration_bounds = array<i64: 2, 1>, scalar_prefetch = 0 : i64, scratch_operands = 0 : i64, tpu.core_type = #tpu.core_type<tc>, window_params = [{pipeline_mode = #tpu.pipeline_mode<synchronous>, transform_indices = @transform_0, window_bounds = array<i64: 4, 4>}, {transform_indices = @transform_1, window_bounds = array<i64: 1, 4, 256>}, {transform_indices = @transform_2, window_bounds = array<i64: 1, 4, 256>}]} {
    %c0 = arith.constant 0 : index
    %c0_0 = arith.constant 0 : index
    %0 = vector.load %arg2[%c0, %c0_0] : memref<4x4xf32, #tpu.memory_space<vmem>>, vector<4x4xf32>
    %c0_1 = arith.constant 0 : index
    %c0_2 = arith.constant 0 : index
    %c0_3 = arith.constant 0 : index
    %1 = vector.load %arg3[%c0_1, %c0_2, %c0_3] : memref<1x4x256xf32, #tpu.memory_space<vmem>>, vector<1x4x256xf32>
    %2 = vector.shape_cast %1 : vector<1x4x256xf32> to vector<4x256xf32>
    %cst = arith.constant dense<0.000000e+00> : vector<4x256xf32>
    %3 = tpu.matmul %0, %2, %cst {dimension_numbers = #tpu.dot_dimension_numbers<[1], [0], [0], [1], [0, 0, 1, 1], [], []>, precision = #tpu.contract_precision<fp32>} : vector<4x4xf32>, vector<4x256xf32>, vector<4x256xf32> -> vector<4x256xf32>
    %c0_4 = arith.constant 0 : index
    %c0_5 = arith.constant 0 : index
    %c0_6 = arith.constant 0 : index
    %4 = vector.load %arg4[%c0_4, %c0_5, %c0_6] : memref<1x4x256xf32, #tpu.memory_space<vmem>>, vector<1x4x256xf32>
    %5 = vector.shape_cast %4 : vector<1x4x256xf32> to vector<4x256xf32>
    %6 = vector.shape_cast %3 : vector<4x256xf32> to vector<1x4x256xf32>
    tpu.vector_store %arg4[%c0_4, %c0_5, %c0_6], %6 {strides = array<i32>} : memref<1x4x256xf32, #tpu.memory_space<vmem>>, vector<1x4x256xf32>,
    return
  }
  func.func @transform_0(%arg0: i32, %arg1: i32) -> (i32, i32) {
    %c0_i32 = arith.constant 0 : i32
    %c0_i32_0 = arith.constant 0 : i32
    %c0_i32_1 = arith.constant 0 : i32
    return %c0_i32, %c0_i32_0 : i32, i32
  }
  func.func @transform_1(%arg0: i32, %arg1: i32) -> (i32, i32, i32) {
    %c0_i32 = arith.constant 0 : i32
    %c0_i32_0 = arith.constant 0 : i32
    return %arg0, %c0_i32, %arg1 : i32, i32, i32
  }
  func.func @transform_2(%arg0: i32, %arg1: i32) -> (i32, i32, i32) {
    %c0_i32 = arith.constant 0 : i32
    %c0_i32_0 = arith.constant 0 : i32
    return %arg0, %c0_i32, %arg1 : i32, i32, i32
  }
}

</mosaic_0001>

<bundles_post_ra>
// kernel: tpu_custom_call.1
= control target key start
LH: loop header
LB: loop body
LE: loop exit
PB: predicated region body
PF: predicated region fallthrough
CT: control target
= control target key end

     0   :  { %7 = vsyncpa [#allocation3], 0  ;;  %s1207_s0 = inlined_call_operand.hbm [shape: f32[4,4], index: 0, kind: input, shape index: {}]   ;;  %s1208_s1 = inlined_call_operand.hbm [shape: f32[2,4,256], index: 1, kind: input, shape index: {}]   ;;  %s1209_s2 = inlined_call_operand.hbm [shape: f32[2,4,256], index: 2, kind: output, shape index: {}]  }
   0x1   :  { %8 = vsyncpa [#allocation6], 0 }
   0x2   :  { %10 = vsyncpa [#allocation6 + $0x1], 0 }
   0x3   :  { %11 = vsyncpa [#allocation4], 0 }
   0x4   :  { %13 = vsyncpa [#allocation4 + $0x1], 0  ;;  %s1042_s9 = smov 0   ;;  %s1044_s10 = smov 0  }
   0x5   :  { %s1046_s11 = smov 0   ;;  %s1048_s12 = smov 0  }
   0x6   :  { %s1050_s13 = smov 0   ;;  %s1052_s14 = smov 0  }
   0x7 LB: > { %s789_s15 = sadd.s32 4294967295, %s1021_s14   ;;  %s790_s16 = sadd.s32 4294967294, %s1021_s14   ;;  %s1021_s14 = sphi %s1052_s14, %s19_s14   ;;  %s1017_s13 = sphi %s1050_s13, %s1226_s13   ;;  %s1013_s12 = sphi %s1048_s12, %s1225_s12   ;;  %s1009_s11 = sphi %s1046_s11, %s1224_s11   ;;  %s1005_s10 = sphi %s1044_s10, %s1223_s10   ;;  %s1001_s9 = sphi %s1042_s9, %s1222_s9  }
   0x8   : > { %p74_p0 = scmp.ne.s32.totalorder %s1005_s10, %s1001_s9  ;;  %p1076_p1 = scmp.eq.s32.totalorder %s789_s15, 0 }
   0x9   : > { %p1080_p2 = scmp.eq.s32.totalorder %s789_s15, 1  ;;  %p106_p3 = scmp.eq.s32.totalorder %s790_s16, 1 }
   0xa   : > { %p1086_p4 = por %p1076_p1, %p74_p0  ;;  %p791_p5 = scmp.ge.s32.totalorder %s1021_s14, 1 }
   0xb   : > { %p1091_p6 = por %p106_p3, %p74_p0  ;;  %p113_p7 = scmp.lt.s32.totalorder %s1021_s14, 3 }
   0xc   : > { %s1213_s19 = scalar_select %p1086_p4, 1, 0 }
   0xd   : > { %s1214_s20 = scalar_select %p1091_p6, 1, 0 }
   0xe   : > { %p1096_p8 = pnand %p791_p5, %p113_p7  ;;  %s1023_s22 = smov [#allocation2]  }
   0xf   : > { %s126_s23 = sshll.u32 %s1023_s22, 4  ;;  %s31_s25 = sadd.s32 1, %s1017_s13  ;;  %s127_s23 = int_to_ptr.vmem [resolvable:$true] %s126_s23 }
  0x10   : > { %p816_p10 = pneg %p1096_p8  ;;  %s61_s26 = sadd.s32 1, %s1009_s11 }
  0x11   : > { %p33_p12 = scmp.ge.s32.totalorder %s31_s25, 2  ;;  %s894_s27 = scalar_lea.vmem %s127_s23, 64 }
  0x12   : > { %p1105_p11 = pnand %p816_p10, %p1076_p1  ;;  %p895_p0 = scmp.ne.s32.totalorder %s127_s23, %s894_s27 }
  0x13   : > { %p902_p7 = scmp.lt.s32.totalorder %s127_s23, %s127_s23  ;;  %p903_p6 = scmp.lt.s32.totalorder %s894_s27, %s894_s27 }
  0x14   : > { %p885_p13 = pneg %p1105_p11 }
  0x15   : > { %p904_p9 = por %p903_p6, %p902_p7 }
  0x16   : > { %p897_p3 = pnand %p895_p0, %p885_p13 }
  0x18   : > { %p898_p5 = pneg %p897_p3 }
  0x1a   : > { %p905_p4 = pnand %p904_p9, %p898_p5 }
  0x1c   : > { %908 = shalt.err (!%p905_p4)
}
  0x1d   : > { %819 = dma.hbm_to_vmem [thread:$0]  (!%p1105_p11), %s1207_s0, 64, %s127_s23, [#allocation3]  }
  0x1e   : > { %s1228_s25 = smov (%p33_p12, %s31_s25), 0  ;;  %p68_p6 = scmp.ne.s32.totalorder %s1009_s11, %s1005_s10 }
  0x1f   : > { %p69_p4 = scmp.eq.s32.totalorder %s1021_s14, 0  ;;  %s56_s30 = ssub.s32 %s1017_s13, %s1228_s25 }
  0x20   : > { %p829_p9 = scmp.lt.s32.totalorder %s1021_s14, 2  ;;  %p59_p10 = scmp.eq.s32.totalorder %s56_s30, 0 }
  0x21   : > { %p70_p13 = por %p69_p4, %p68_p6  ;;  %p1128_p0 = por %p1080_p2, %p68_p6 }
  0x22   : > { %s137_s4 = sand.u32 1, %s1009_s11   ;;  %s806_s7 = sshll.u32 %s1017_s13, 7 }
  0x23   : > { %s1134_s5 = scalar_select %p59_p10, %s1009_s11, %s61_s26  }
  0x24   : > { %s794_s6 = sshll.u32 %s137_s4, 3  ;;  %s149_s16 = scalar_lea.hbm %s1208_s1, %s806_s7 }
  0x25   : > { %s141_s22 = scalar_lea.vmem [#allocation5], %s794_s6  ;;  %p1140_p11 = pnand %p829_p9, %p70_p13 }
  0x26   : > { %s151_s23 = sshll.u32 %s141_s22, 4  ;;  %s138_s18 = scalar_lea.sflag [#allocation6], %s137_s4  ;;  %s152_s23 = int_to_ptr.vmem [resolvable:$true] %s151_s23 }
  0x27   : > { %p911_p2 = pneg %p1140_p11  ;;  %s922_s27 = scalar_lea.vmem %s152_s23, 128 }
  0x28   : > { %p923_p12 = scmp.ne.s32.totalorder %s152_s23, %s922_s27  ;;  %s1024_s26 = smov [#allocation5]  }
  0x29   : > { %s927_s28 = sshll.u32 %s1024_s26, 4  ;;  %s928_s28 = int_to_ptr.vmem [resolvable:$false] %s927_s28 }
  0x2a   : > { %p925_p3 = pnand %p923_p12, %p911_p2  ;;  %s929_s29 = scalar_lea.vmem %s928_s28, 256 }
  0x2b   : > { %p930_p7 = scmp.lt.s32.totalorder %s152_s23, %s928_s28  ;;  %p931_p6 = scmp.lt.s32.totalorder %s929_s29, %s922_s27 }
  0x2c   : > { %p926_p5 = pneg %p925_p3 }
  0x2d   : > { %p932_p4 = por %p931_p6, %p930_p7 }
  0x2f   : > { %p933_p10 = pnand %p932_p4, %p926_p5 }
  0x31   : > { %936 = shalt.err (!%p933_p10)
}
  0x32   : > { %823 = dma.hbm_to_vmem [thread:$0]  (!%p1140_p11), %s149_s16, 128, %s152_s23, %s138_s18  }
  0x33   : > { %160 = sbr.rel (%p1096_p8) target bundleno = 298 (0x12a), region = 28 }
  0x38   : > { %988 = dma.done.wait (%p1076_p1), [#allocation3], 64  }
  0x39   : > { %990 = vsyncadd (%p1076_p1), [#allocation3], 4294967232  ;;  %s1155_s30 = sand.u32 1, %s1005_s10   ;;  %p1219_p9 = scmp.ne.s32.totalorder %s1213_s19, 0 }
  0x3a   : > { %s799_s4 = sshll.u32 %s1155_s30, 3  ;;  %s167_s6 = scalar_lea.sflag [#allocation6], %s1155_s30 }
  0x3b   : > { %s170_s7 = scalar_lea.vmem [#allocation5], %s799_s4 }
  0x3c   : > { %992 = dma.done.wait (%p1219_p9), %s167_s6, 128  }
  0x3d   : > { %994 = vsyncadd (%p1219_p9), %s167_s6, 4294967168  ;;  %v1025_v0 = vmov 0.0   ;;  %vm201_vm0 = vcmask 1043456   ;;  %vm197_vm1 = vcmask 31744   ;;  %v194_v1 = vld [vmem:[%s170_s7] sm:$0xff]  ;;  %s807_s17 = sshll.u32 %s1013_s12, 7 }
  0x3e   : > { %272 = vmatprep.mubr.f32.mxu0 %v1025_v0  ;;  %358 = vmatprep.mubr.f32.mxu1 %v1025_v0  ;;  %v193_v2 = vld [vmem:[#allocation2] sm:$0xf]  ;;  %v196_v3 = vcombine.high %v194_v1, %v194_v1  ;;  %v202_v4 = vsel %vm201_vm0, %v194_v1, 0  ;;  %s190_s19 = scalar_lea.vmem [#allocation7], %s799_s4  ;;  %s691_s16 = scalar_lea.hbm %s1209_s2, %s807_s17 }
  0x3f   : > { %v199_v5 = vsel %vm197_vm1, %v193_v2, 0  ;;  %v238_v6 = vand.u32 4294901760, %v202_v4  ;;  %s693_s21 = sshll.u32 %s190_s19, 4  ;;  %s677_s22 = scalar_lea.sflag [#allocation4], %s1155_s30  ;;  %s694_s21 = int_to_ptr.vmem [resolvable:$true] %s693_s21 }
  0x40   : > { %v273_v7 = vand.u32 4294901760, %v199_v5  ;;  %v204_v8 = vsel %vm201_vm0, %v196_v3, 0  ;;  %s937_s23 = scalar_lea.vmem %s694_s21, 128  ;;  %s1026_s24 = smov [#allocation7]  }
  0x41   : > { %v236_v9 = vand.u32 4294901760, %v204_v8  ;;  %v321_v11 = vsub.f32 %v202_v4, %v238_v6  ;;  %p938_p1 = scmp.ne.s32.totalorder %s694_s21, %s937_s23  ;;  %s941_s12 = sshll.u32 %s1026_s24, 4  ;;  %s942_s12 = int_to_ptr.vmem [resolvable:$false] %s941_s12 }
  0x42   : > { %v274_v10 = vsub.f32 %v199_v5, %v273_v7  ;;  %s943_s18 = scalar_lea.vmem %s942_s12, 256  ;;  %p944_p11 = scmp.lt.s32.totalorder %s694_s21, %s942_s12 }
  0x43   : > { %237 = vmatprep.subr.mxu0 %v236_v9  ;;  %v315_v13 = vsub.f32 %v204_v8, %v236_v9  ;;  %v322_v14 = vand.u32 4294901760, %v321_v11  ;;  %p939_p8 = pnand %p938_p1, %p1128_p0  ;;  %p945_p2 = scmp.lt.s32.totalorder %s943_s18, %s937_s23 }
  0x44   : > { %v275_v12 = vand.u32 4294901760, %v274_v10  ;;  %239 = vmatpush1.msra.mxu0 %v238_v6 }
  0x45   : > { %v316_v16 = vand.u32 4294901760, %v315_v13  ;;  %398 = vmatprep.subr.mxu0 %v315_v13  ;;  %v323_v17 = vsub.f32 %v321_v11, %v322_v14  ;;  %p940_p13 = pneg %p939_p8  ;;  %p946_p12 = por %p945_p2, %p944_p11 }
  0x46   : > { %v276_v15 = vsub.f32 %v274_v10, %v275_v12 }
  0x47   : > { %v317_v19 = vsub.f32 %v315_v13, %v316_v16  ;;  %v324_v20 = vand.u32 4294901760, %v323_v17  ;;  %p947_p3 = pnand %p946_p12, %p940_p13 }
  0x48   : > { %v277_v18 = vand.u32 4294901760, %v276_v15 }
  0x49   : > { %v318_v21 = vand.u32 4294901760, %v317_v19 }
  0x4a   : > { %278 = vmatmul.mubr.f32.vlgmr.msra.gmra.mxu0 %v277_v18 }
  0x4b   : > { %401 = vmatpush1.msra.mxu0 %v321_v11  ;;  %434 = vmatprep.mubr.f32.mxu0 %v1025_v0 }
  0x4c   : > { %319 = vmatprep.subr.mxu1 %v318_v21  ;;  %552 = vmatprep.subr.mxu0 %v316_v16 }
  0x4d   : > { %325 = vmatpush1.msra.mxu1 %v324_v20 }
  0x4e   : > { %360 = vmatmul.mubr.f32.vlgmr.msra.gmra.mxu1 %v273_v7  ;;  %474 = vmatprep.subr.mxu1 %v236_v9 }
  0x4f   : > { %437 = vmatmul.mubr.f32.vlgmr.msra.gmra.mxu0 %v274_v10  ;;  %476 = vmatpush1.msra.mxu1 %v238_v6 }
  0x50   : > { %509 = vmatprep.mubr.f32.mxu1 %v1025_v0  ;;  %556 = vmatpush1.msra.mxu0 %v322_v14 }
  0x51   : > { %589 = vmatprep.mubr.f32.mxu0 %v1025_v0  ;;  %628 = vmatprep.subr.mxu1 %v236_v9 }
  0x52   : > { %513 = vmatmul.mubr.f32.vlgmr.msra.gmra.mxu1 %v275_v12 }
  0x53   : > { %591 = vmatmul.mubr.f32.vlgmr.msra.gmra.mxu0 %v273_v7  ;;  %630 = vmatpush1.msra.mxu1 %v238_v6 }
  0x54   : > { %663 = vmatprep.mubr.f32.mxu1 %v1025_v0 }
  0x56   : > { %665 = vmatmul.mubr.f32.vlgmr.msra.gmra.mxu1 %v273_v7 }
 0x10a   : > { %v279_v22 = vpop.f32.mrf.mxu0 }
 0x10c   : > { %v281_v23 = vpop.f32.mrf.mxu0 }
 0x10e   : > { %v361_v24 = vpop.f32.mrf.mxu1 }
 0x10f   : > { %v362_v25 = vadd.f32 %v361_v24, %v279_v22  ;;  %v438_v26 = vpop.f32.mrf.mxu0 }
 0x110   : > { %v363_v27 = vpop.f32.mrf.mxu1 }
 0x111   : > { %v439_v28 = vadd.f32 %v438_v26, %v362_v25  ;;  %v364_v29 = vadd.f32 %v363_v27, %v281_v23  ;;  %v440_v30 = vpop.f32.mrf.mxu0 }
 0x112   : > { %v514_v31 = vpop.f32.mrf.mxu1 }
 0x113   : > { %v441_v32 = vadd.f32 %v440_v30, %v364_v29  ;;  %v515_v33 = vadd.f32 %v514_v31, %v439_v28  ;;  %v592_v34 = vpop.f32.mrf.mxu0 }
 0x114   : > { %v516_v35 = vpop.f32.mrf.mxu1 }
 0x115   : > { %v593_v36 = vadd.f32 %v592_v34, %v515_v33  ;;  %v517_v37 = vadd.f32 %v516_v35, %v441_v32  ;;  %v594_v38 = vpop.f32.mrf.mxu0 }
 0x116   : > { %v666_v39 = vpop.f32.mrf.mxu1 }
 0x117   : > { %v595_v40 = vadd.f32 %v594_v38, %v517_v37  ;;  %v667_v42 = vadd.f32 %v666_v39, %v593_v36 }
 0x118   : > { %v668_v41 = vpop.f32.mrf.mxu1 }
 0x119   : > { %v669_v43 = vadd.f32 %v668_v41, %v595_v40 }
 0x11b   : > { %v673_v44 = vcombine.low %v667_v42, %v669_v43 }
 0x11d   : > { %675 = vst [vmem:[%s190_s19] sm:$0xff] %v673_v44 }
 0x11e   : > { %950 = shalt.err (!%p947_p3)
}
 0x11f   : > { %s951_s27 = scalar_lea.hbm %s691_s16, 128  ;;  %s955_s29 = scalar_lea.hbm %s1209_s2, 256 }
 0x120   : > { %p952_p5 = scmp.ne.s32.totalorder %s691_s16, %s951_s27  ;;  %p956_p4 = scmp.lt.s32.totalorder %s691_s16, %s1209_s2 }
 0x121   : > { %p957_p10 = scmp.lt.s32.totalorder %s955_s29, %s951_s27 }
 0x122   : > { %p953_p7 = pnand %p952_p5, %p1128_p0 }
 0x123   : > { %p958_p9 = por %p957_p10, %p956_p4 }
 0x124   : > { %p954_p6 = pneg %p953_p7 }
 0x126   : > { %p959_p1 = pnand %p958_p9, %p954_p6 }
 0x128   : > { %962 = shalt.err (!%p959_p1)
}
 0x129   : > { %814 = dma.vmem_to_hbm [thread:$0]  (%p1128_p0), %s694_s21, 128, %s691_s16, %s677_s22  }
 0x12a PF: > { %s705_s6 = sand.u32 1, %s1001_s9   ;;  %p1220_p8 = scmp.ne.s32.totalorder %s1214_s20, 0 }
 0x12b   : > { %p1221_p13 = scmp.ge.s32.totalorder %s1021_s14, 2  ;;  %s706_s7 = scalar_lea.sflag [#allocation4], %s705_s6 }
 0x12d   : > { %p825_p11 = pnand %p1221_p13, %p1220_p8 }
 0x12f   : > { %p826_p2 = pneg %p825_p11 }
 0x131   : > { %996 = dma.done.wait (%p826_p2), %s706_s7, 128  }
 0x132   : > { %998 = vsyncadd (%p826_p2), %s706_s7, 4294967168  ;;  %s19_s14 = sadd.s32 1, %s1021_s14   ;;  %s1222_s9 = smov %s1005_s10 }
 0x133   : > { %p16_p12 = scmp.ge.s32.totalorder %s19_s14, 4   ;;  %s1223_s10 = smov %s1009_s11 }
 0x134   : > { %s1224_s11 = smov %s1134_s5  ;;  %s1225_s12 = smov %s1017_s13 }
 0x135   : > { %s1226_s13 = smov %s1228_s25  ;;  %18 = sbr.rel (!%p16_p12) target bundleno = 7 (0x7), region = 78 }
 0x13a   :  { %711 = vsyncpa [#allocation3], 1 }
 0x13b   :  { %713 = vsyncpa [#allocation3 + $0x1], 1 }
 0x13c   :  { %714 = vsyncpa [#allocation6], 1 }
 0x13d   :  { %716 = vsyncpa [#allocation6 + $0x1], 1 }
 0x13e   :  { %717 = vsyncpa [#allocation4], 1 }
 0x13f   :  { %719 = vsyncpa [#allocation4 + $0x1], 1 }

</bundles_post_ra>
